<compile_context>
chip_gen: v5e
topology: v5e:2x2
jax: 0.10.0
libtpu: 0.0.40
codegen_flags: <defaults>
</compile_context>

<pallas_src>
import functools

import jax
import jax.numpy as jnp
from jax.experimental import pallas as pl
from jax.experimental.pallas import tpu as pltpu


def _round_up(a, m):
    return ((a + m - 1) // m) * m


def _cdiv(a, b):
    return -(-a // b)


def _vmem_capacity_bytes():
    """Per-core VMEM capacity; conservative fallback when not on a TPU."""
    try:
        return int(pltpu.get_tpu_info().vmem_capacity_bytes)
    except Exception:
        return 64 * 2**20   # v7x per-TensorCore VMEM (smallest current part)


# ----------------------------------------------------------------------------
# Kernels
# ----------------------------------------------------------------------------
def _project(x_ref, w_ref, b_ref, hid):
    """Fused mu/log_var projection on one row tile. Returns (mu, lv) in f32."""
    xv = x_ref[...]
    if xv.dtype != w_ref.dtype:
        xv = xv.astype(w_ref.dtype)        # cast on the VMEM tile, not in HBM
    y = jnp.dot(xv, w_ref[...], preferred_element_type=jnp.float32) + b_ref[...]
    return y[:, :hid], y[:, hid:]


def _latent_eval_kernel(x_ref, w_ref, b_ref, mu_ref, lv_ref, *, hid):
    mu, lv = _project(x_ref, w_ref, b_ref, hid)
    mu_ref[...] = mu.astype(mu_ref.dtype)
    lv_ref[...] = lv.astype(lv_ref.dtype)
    # z == mu in eval mode; the wrapper aliases mu as z (no third HBM write).


def _latent_train_kernel(x_ref, eps_ref, w_ref, b_ref, mu_ref, lv_ref, z_ref,
                         *, hid):
    mu, lv = _project(x_ref, w_ref, b_ref, hid)
    mu_ref[...] = mu.astype(mu_ref.dtype)
    lv_ref[...] = lv.astype(lv_ref.dtype)
    eps = eps_ref[...].astype(jnp.float32)
    z_ref[...] = (mu + eps * jnp.exp(0.5 * lv)).astype(z_ref.dtype)


# ----------------------------------------------------------------------------
# Parameter preparation (done once, NOT per forward call)
# ----------------------------------------------------------------------------
def prepare_latent_params(w_mu, b_mu, w_lv, b_lv, *,
                          compute_dtype=jnp.bfloat16):
    """Fuse + transpose the two Linear layers into one (H, 2H) weight.

    w_mu, w_lv : (H, H) PyTorch-convention weights (out, in)
    b_mu, b_lv : (H,)
    compute_dtype: matmul operand dtype (bf16 default: MXU-native on v6e/v7x,
                   half the HBM/VMEM bytes; accumulation stays f32).
    """
    H = int(w_mu.shape[0])
    w = jnp.concatenate([w_mu.T.astype(compute_dtype),
                         w_lv.T.astype(compute_dtype)], axis=1)       # (H, 2H)
    b = jnp.concatenate([b_mu, b_lv]).astype(jnp.float32).reshape(1, 2 * H)
    return {"w": w, "b": b, "hiddim": H}


# ----------------------------------------------------------------------------
# Forward wrapper
# ----------------------------------------------------------------------------
def latent_space_forward(x, params, *, training, rng_key=None, eps=None,
                         row_tile=512, out_dtype=None):
    """Pallas implementation of LatentSpace.forward.

    x: (..., H). Returns {'mu', 'log_var', 'z'}, each shaped like x.
    In training mode, pass `rng_key` (eps is drawn in the wrapper) or an
    explicit `eps` array shaped like x.
    """
    w, b = params["w"], params["b"]
    H = params["hiddim"]

    orig_shape = x.shape
    assert orig_shape[-1] == H, "last dim of x must equal hiddim"
    x2 = x.reshape(-1, H)                       # no dtype cast / no padding
    N = x2.shape[0]
    out_dtype = x.dtype if out_dtype is None else out_dtype
    training = bool(training)

    if training:
        if eps is None:
            if rng_key is None:
                raise ValueError("training=True requires rng_key or eps")
            eps = jax.random.normal(rng_key, (N, H), dtype=w.dtype)
        else:
            eps = eps.reshape(N, H)

    # ---- row-tile selection with full VMEM accounting ----------------------
    n_out = 3 if training else 2
    x_isz = x2.dtype.itemsize
    o_isz = jnp.dtype(out_dtype).itemsize
    e_isz = eps.dtype.itemsize if training else 0
    # Resident weight + bias (constant index_map) counted double-buffered
    # (conservative: we do not request single-buffering via pipeline_mode).
    w_bytes = 2 * (w.size * w.dtype.itemsize + b.size * b.dtype.itemsize)

    def working_set(r):
        io = 2 * r * H * (x_isz + e_isz + n_out * o_isz)     # pipelined tiles
        interm = (2 + (4 if training else 1)) * r * H * 4    # f32 y + temps
        return w_bytes + io + interm

    cap = _vmem_capacity_bytes()
    budget = max(24 * 2**20, int(0.70 * cap))   # bigger tiles on 128 MiB parts

    rt = max(8, min(_round_up(row_tile, 8), _round_up(N, 8)))
    while rt > 8 and working_set(rt) > budget:
        rt = max(8, _round_up(rt // 2, 8))
    # Keep >= 4 grid steps when there is enough work: 2 per v7x TensorCore so
    # prefetch of step i+1 overlaps compute of step i on each core.
    if N >= 4 * 64 and _cdiv(N, rt) < 4:
        rt = max(8, _round_up(_cdiv(N, 4), 8))
    # Prefer a nearby divisor of N so the tail tile is not masked.
    if N > 8 and N % 8 == 0 and N % rt != 0:
        for d in range(rt, max(8, rt // 4) - 1, -8):
            if N % d == 0:
                rt = d
                break

    grid = (_cdiv(N, rt),)
    est = working_set(rt)
    vmem_limit = int(min(max(int(1.2 * est) + (1 << 20), 32 * 2**20),
                         cap - 12 * 2**20))

    # ---- specs --------------------------------------------------------------
    row_spec = pl.BlockSpec((rt, H), lambda i: (i, 0))
    w_spec = pl.BlockSpec((H, 2 * H), lambda i: (0, 0))     # resident
    b_spec = pl.BlockSpec((1, 2 * H), lambda i: (0, 0))     # resident

    if training:
        kernel = functools.partial(_latent_train_kernel, hid=H)
        in_specs = [row_spec, row_spec, w_spec, b_spec]
        inputs = (x2, eps, w, b)
    else:
        kernel = functools.partial(_latent_eval_kernel, hid=H)
        in_specs = [row_spec, w_spec, b_spec]
        inputs = (x2, w, b)

    out_shape = tuple(jax.ShapeDtypeStruct((N, H), out_dtype)
                      for _ in range(n_out))

    outs = pl.pallas_call(
        kernel,
        out_shape=out_shape,
        grid_spec=pltpu.PrefetchScalarGridSpec(
            num_scalar_prefetch=0,
            grid=grid,
            in_specs=in_specs,
            out_specs=[row_spec] * n_out,
        ),
        compiler_params=pltpu.CompilerParams(
            dimension_semantics=("parallel",),
            vmem_limit_bytes=vmem_limit,
        ),
    )(*inputs)

    def _reshape(a):
        return a.reshape(orig_shape)

    if training:
        mu, lv, z = outs
        return {"mu": _reshape(mu), "log_var": _reshape(lv), "z": _reshape(z)}
    mu, lv = outs
    mu = _reshape(mu)
    return {"mu": mu, "log_var": _reshape(lv), "z": mu}   # z aliases mu


# ----------------------------------------------------------------------------
# Demo / self-check
# ----------------------------------------------------------------------------
def _init_linear(key, out_features, in_features):
    """Deterministic init mimicking nn.Linear default (uniform +-1/sqrt(in))."""
    k_w, k_b = jax.random.split(key)
    bound = 1.0 / jnp.sqrt(in_features)
    w = jax.random.uniform(k_w, (out_features, in_features),
                           minval=-bound, maxval=bound, dtype=jnp.float32)
    b = jax.random.uniform(k_b, (out_features,),
                           minval=-bound, maxval=bound, dtype=jnp.float32)
    return w, b


if __name__ == "__main__":
    B, T, HID = 2, 8, 32
    key = jax.random.PRNGKey(0)
    k_x, k_mu, k_lv, k_eps = jax.random.split(key, 4)

    x = jax.random.normal(k_x, (B, T, HID), dtype=jnp.float32)
    w_mu, b_mu = _init_linear(k_mu, HID, HID)
    w_lv, b_lv = _init_linear(k_lv, HID, HID)

    # Reference (f32).
    mu_ref = x @ w_mu.T + b_mu
    lv_ref = x @ w_lv.T + b_lv

    # f32 compute path: tight correctness checks.
    params_f32 = prepare_latent_params(w_mu, b_mu, w_lv, b_lv,
                                       compute_dtype=jnp.float32)

    # Training with an explicit eps -> z checked exactly against reference.
    eps = jax.random.normal(k_eps, (B, T, HID), dtype=jnp.float32)
    out_tr = latent_space_forward(x, params_f32, training=True, eps=eps)
    jax.block_until_ready(out_tr)
    z_ref = mu_ref + eps * jnp.exp(0.5 * lv_ref)
    assert jnp.allclose(out_tr["mu"], mu_ref, atol=1e-5, rtol=1e-5)
    assert jnp.allclose(out_tr["log_var"], lv_ref, atol=1e-5, rtol=1e-5)
    assert jnp.allclose(out_tr["z"], z_ref, atol=1e-4, rtol=1e-4)

    # Training with rng_key only (eps drawn inside the wrapper).
    out_tr2 = latent_space_forward(x, params_f32, training=True, rng_key=k_eps)
    jax.block_until_ready(out_tr2)
    assert bool(jnp.all(jnp.isfinite(out_tr2["z"])))
    assert not bool(jnp.allclose(out_tr2["z"], out_tr2["mu"]))

    # Eval: kernel writes only mu / log_var; z aliases mu exactly.
    out_ev = latent_space_forward(x, params_f32, training=False)
    jax.block_until_ready(out_ev)
    assert jnp.allclose(out_ev["mu"], mu_ref, atol=1e-5, rtol=1e-5)
    assert jnp.allclose(out_ev["log_var"], lv_ref, atol=1e-5, rtol=1e-5)
    assert bool(jnp.array_equal(out_ev["z"], out_ev["mu"]))

    # Default bf16 compute path (MXU-native on v6e/v7x, half the HBM bytes).
    params_bf16 = prepare_latent_params(w_mu, b_mu, w_lv, b_lv)
    out_bf = latent_space_forward(x, params_bf16, training=False)
    jax.block_until_ready(out_bf)
    assert jnp.allclose(out_bf["mu"], mu_ref, atol=5e-2, rtol=5e-2)
    assert jnp.allclose(out_bf["log_var"], lv_ref, atol=5e-2, rtol=5e-2)

    print("KERNEL_OK")
</pallas_src>

<mosaic_0001>
module attributes {stable_mosaic.version = 11 : i64} {
  func.func @_latent_train_kernel(%arg0: i32, %arg1: memref<16x32xf32, #tpu.memory_space<vmem>>, %arg2: memref<16x32xf32, #tpu.memory_space<vmem>>, %arg3: memref<32x64xf32, #tpu.memory_space<vmem>>, %arg4: memref<1x64xf32, #tpu.memory_space<vmem>>, %arg5: memref<16x32xf32, #tpu.memory_space<vmem>>, %arg6: memref<16x32xf32, #tpu.memory_space<vmem>>, %arg7: memref<16x32xf32, #tpu.memory_space<vmem>>) attributes {dimension_semantics = [#tpu.dimension_semantics<parallel>], iteration_bounds = array<i64: 1>, scalar_prefetch = 0 : i64, scratch_operands = 0 : i64, tpu.core_type = #tpu.core_type<tc>, window_params = [{transform_indices = @transform_0, window_bounds = array<i64: 16, 32>}, {transform_indices = @transform_1, window_bounds = array<i64: 16, 32>}, {pipeline_mode = #tpu.pipeline_mode<synchronous>, transform_indices = @transform_2, window_bounds = array<i64: 32, 64>}, {pipeline_mode = #tpu.pipeline_mode<synchronous>, transform_indices = @transform_3, window_bounds = array<i64: 1, 64>}, {transform_indices = @transform_4, window_bounds = array<i64: 16, 32>}, {transform_indices = @transform_5, window_bounds = array<i64: 16, 32>}, {transform_indices = @transform_6, window_bounds = array<i64: 16, 32>}]} {
    %c0 = arith.constant 0 : index
    %c0_0 = arith.constant 0 : index
    %0 = vector.load %arg1[%c0, %c0_0] : memref<16x32xf32, #tpu.memory_space<vmem>>, vector<16x32xf32>
    %c0_1 = arith.constant 0 : index
    %c0_2 = arith.constant 0 : index
    %1 = vector.load %arg3[%c0_1, %c0_2] : memref<32x64xf32, #tpu.memory_space<vmem>>, vector<32x64xf32>
    %cst = arith.constant dense<0.000000e+00> : vector<16x64xf32>
    %2 = tpu.matmul %0, %1, %cst {dimension_numbers = #tpu.dot_dimension_numbers<[1], [0], [0], [1], [0, 0, 1, 1], [], []>} : vector<16x32xf32>, vector<32x64xf32>, vector<16x64xf32> -> vector<16x64xf32>
    %c0_3 = arith.constant 0 : index
    %c0_4 = arith.constant 0 : index
    %3 = vector.load %arg4[%c0_3, %c0_4] : memref<1x64xf32, #tpu.memory_space<vmem>>, vector<1x64xf32>
    %4 = vector.broadcast %3 : vector<1x64xf32> to vector<16x64xf32>
    %5 = arith.addf %2, %4 : vector<16x64xf32>
    %6 = vector.extract_strided_slice %5 {offsets = [0, 0], sizes = [16, 32], strides = [1, 1]} : vector<16x64xf32> to vector<16x32xf32>
    %7 = vector.extract_strided_slice %5 {offsets = [0, 32], sizes = [16, 32], strides = [1, 1]} : vector<16x64xf32> to vector<16x32xf32>
    %c0_5 = arith.constant 0 : index
    %c0_6 = arith.constant 0 : index
    %8 = vector.load %arg5[%c0_5, %c0_6] : memref<16x32xf32, #tpu.memory_space<vmem>>, vector<16x32xf32>
    tpu.vector_store %arg5[%c0_5, %c0_6], %6 {strides = array<i32>} : memref<16x32xf32, #tpu.memory_space<vmem>>, vector<16x32xf32>,
    %c0_7 = arith.constant 0 : index
    %c0_8 = arith.constant 0 : index
    %9 = vector.load %arg6[%c0_7, %c0_8] : memref<16x32xf32, #tpu.memory_space<vmem>>, vector<16x32xf32>
    tpu.vector_store %arg6[%c0_7, %c0_8], %7 {strides = array<i32>} : memref<16x32xf32, #tpu.memory_space<vmem>>, vector<16x32xf32>,
    %c0_9 = arith.constant 0 : index
    %c0_10 = arith.constant 0 : index
    %10 = vector.load %arg2[%c0_9, %c0_10] : memref<16x32xf32, #tpu.memory_space<vmem>>, vector<16x32xf32>
    %cst_11 = arith.constant 5.000000e-01 : f32
    %11 = vector.broadcast %cst_11 : f32 to vector<16x32xf32>
    %12 = arith.mulf %11, %7 : vector<16x32xf32>
    %13 = math.exp %12 : vector<16x32xf32>
    %14 = arith.mulf %10, %13 : vector<16x32xf32>
    %15 = arith.addf %6, %14 : vector<16x32xf32>
    %c0_12 = arith.constant 0 : index
    %c0_13 = arith.constant 0 : index
    %16 = vector.load %arg7[%c0_12, %c0_13] : memref<16x32xf32, #tpu.memory_space<vmem>>, vector<16x32xf32>
    tpu.vector_store %arg7[%c0_12, %c0_13], %15 {strides = array<i32>} : memref<16x32xf32, #tpu.memory_space<vmem>>, vector<16x32xf32>,
    return
  }
  func.func @transform_0(%arg0: i32) -> (i32, i32) {
    %c0_i32 = arith.constant 0 : i32
    %c0_i32_0 = arith.constant 0 : i32
    return %arg0, %c0_i32 : i32, i32
  }
  func.func @transform_1(%arg0: i32) -> (i32, i32) {
    %c0_i32 = arith.constant 0 : i32
    %c0_i32_0 = arith.constant 0 : i32
    return %arg0, %c0_i32 : i32, i32
  }
  func.func @transform_2(%arg0: i32) -> (i32, i32) {
    %c0_i32 = arith.constant 0 : i32
    %c0_i32_0 = arith.constant 0 : i32
    %c0_i32_1 = arith.constant 0 : i32
    return %c0_i32, %c0_i32_0 : i32, i32
  }
  func.func @transform_3(%arg0: i32) -> (i32, i32) {
    %c0_i32 = arith.constant 0 : i32
    %c0_i32_0 = arith.constant 0 : i32
    %c0_i32_1 = arith.constant 0 : i32
    return %c0_i32, %c0_i32_0 : i32, i32
  }
  func.func @transform_4(%arg0: i32) -> (i32, i32) {
    %c0_i32 = arith.constant 0 : i32
    %c0_i32_0 = arith.constant 0 : i32
    return %arg0, %c0_i32 : i32, i32
  }
  func.func @transform_5(%arg0: i32) -> (i32, i32) {
    %c0_i32 = arith.constant 0 : i32
    %c0_i32_0 = arith.constant 0 : i32
    return %arg0, %c0_i32 : i32, i32
  }
  func.func @transform_6(%arg0: i32) -> (i32, i32) {
    %c0_i32 = arith.constant 0 : i32
    %c0_i32_0 = arith.constant 0 : i32
    return %arg0, %c0_i32 : i32, i32
  }
}

</mosaic_0001>

<bundles_post_ra>
// kernel: tpu_custom_call.1
= control target key start
LH: loop header
LB: loop body
LE: loop exit
PB: predicated region body
PF: predicated region fallthrough
CT: control target
= control target key end

     0   :  { %12 = vsyncpa [#allocation3], 0  ;;  %s461_s0 = inlined_call_operand.hbm [shape: f32[16,32], index: 0, kind: input, shape index: {}]   ;;  %s462_s1 = inlined_call_operand.hbm [shape: f32[16,32], index: 1, kind: input, shape index: {}]   ;;  %s463_s2 = inlined_call_operand.hbm [shape: f32[32,64], index: 2, kind: input, shape index: {}]   ;;  %s464_s3 = inlined_call_operand.vmem [shape: f32[1,64], index: 3, kind: input, shape index: {}]   ;;  %s465_s4 = inlined_call_operand.hbm [shape: f32[16,32], index: 4, kind: output, shape index: {0}]   ;;  %s466_s5 = inlined_call_operand.hbm [shape: f32[16,32], index: 5, kind: output, shape index: {1}]   ;;  %s467_s6 = inlined_call_operand.hbm [shape: f32[16,32], index: 6, kind: output, shape index: {2}]  }
   0x1   :  { %13 = vsyncpa [#allocation6], 0 }
   0x2   :  { %14 = vsyncpa [#allocation4], 0 }
   0x3   :  { %15 = vsyncpa [#allocation10], 0  ;;  %s33_s23 = sshll.u32 %s462_s1, 4  ;;  %s370_s24 = smov [#allocation5]   ;;  %s34_s23 = int_to_ptr.hbm [resolvable:$true] %s33_s23 }
   0x4   :  { %s35_s25 = sshll.u32 %s370_s24, 4  ;;  %s20_s28 = sshll.u32 %s461_s0, 4  ;;  %s36_s25 = int_to_ptr.vmem [resolvable:$true] %s35_s25  ;;  %s21_s28 = int_to_ptr.hbm [resolvable:$true] %s20_s28 }
   0x5   :  { %s371_s29 = smov 128   ;;  %s372_s30 = smov 8  }
   0x6   :  { %41 = dma.hbm_to_vmem [thread:$0]  %s34_s23, 256, %s36_s25, [#allocation6], %s371_s29, %s371_s29, %s372_s30  }
   0x7   :  { %s373_s7 = smov [#allocation2]   ;;  %s46_s1 = sshll.u32 %s463_s2, 4  ;;  %s47_s1 = int_to_ptr.hbm [resolvable:$true] %s46_s1 }
   0x8   :  { %s22_s8 = sshll.u32 %s373_s7, 4  ;;  %s374_s0 = smov [#allocation7]   ;;  %s23_s8 = int_to_ptr.vmem [resolvable:$true] %s22_s8 }
   0x9   :  { %28 = dma.hbm_to_vmem [thread:$0]  %s21_s28, 256, %s23_s8, [#allocation3], %s371_s29, %s371_s29, %s372_s30  }
   0xa   :  { %s48_s11 = sshll.u32 %s374_s0, 4  ;;  %s49_s11 = int_to_ptr.vmem [resolvable:$true] %s48_s11 }
   0xb   :  { %54 = dma.hbm_to_vmem [thread:$0]  %s47_s1, 512, %s49_s11, [#allocation6], %s371_s29, %s371_s29, %s372_s30  }
   0xc   :  { %362 = dma.done.wait [#allocation3], 256  }
   0xd   :  { %363 = vsyncadd [#allocation3], 4294967040 }
   0xe   :  { %364 = dma.done.wait [#allocation6], 768  }
   0xf   :  { %365 = vsyncadd [#allocation6], 4294966528  ;;  %v74_v0 = vld [vmem:[#allocation7 + $0x18] sm:$0xff]  ;;  %v73_v1 = vld [vmem:[#allocation7 + $0x10] sm:$0xff]  ;;  %vm79_vm0 = vcmask 261120   ;;  %s375_s13 = smov 96  }
  0x10   :  { %98 = vmatpush.msra.mxu0 %v74_v0  ;;  %200 = vmatpush.msra.mxu1 %v74_v0  ;;  %v72_v2 = vld [vmem:[#allocation7 + $0x8] sm:$0xff]  ;;  %v71_v3 = vld [vmem:[#allocation7] sm:$0xff]  ;;  %s149_s15 = sshll.u32 %s465_s4, 4  ;;  %s376_s16 = smov [#allocation8]   ;;  %v121_v19 = vld [vmem:[#allocation5] sm:$0xff]  ;;  %s150_s15 = int_to_ptr.hbm [resolvable:$true] %s149_s15 }
  0x11   :  { %v69_v4 = vld [vmem:[#allocation2] sm:$0xff]  ;;  %v70_v5 = vld [vmem:[#allocation2 + $0x8] sm:$0xff]  ;;  %s147_s17 = sshll.u32 %s376_s16, 4  ;;  %s377_s18 = smov [#allocation9]   ;;  %v122_v23 = vld [vmem:[#allocation5 + $0x8] sm:$0xff]  ;;  %s148_s17 = int_to_ptr.vmem [resolvable:$true] %s147_s17 }
  0x12   :  { %99 = vmatpush.msra.mxu0 %v73_v1  ;;  %201 = vmatpush.msra.mxu1 %v73_v1  ;;  %v213_v6 = vld [vmem:[%s464_s3] ss:$0 sm:$0xff]  ;;  %s160_s19 = sshll.u32 %s377_s18, 4  ;;  %s162_s4 = sshll.u32 %s466_s5, 4  ;;  %s161_s19 = int_to_ptr.vmem [resolvable:$true] %s160_s19  ;;  %s163_s4 = int_to_ptr.hbm [resolvable:$true] %s162_s4 }
  0x13   :  { %s378_s22 = smov [#allocation11]   ;;  %s175_s25 = sshll.u32 %s467_s6, 4  ;;  %s176_s25 = int_to_ptr.hbm [resolvable:$true] %s175_s25 }
  0x14   :  { %100 = vmatpush.msra.mxu0 %v72_v2  ;;  %202 = vmatpush.msra.mxu1 %v72_v2  ;;  %s173_s23 = sshll.u32 %s378_s22, 4  ;;  %s174_s23 = int_to_ptr.vmem [resolvable:$true] %s173_s23 }
  0x16   :  { %101 = vmatpush.msra.mxu0 %v71_v3  ;;  %203 = vmatpush.msra.mxu1 %v71_v3 }
  0x17   :  { %198 = vmatmul.msk.f32.vlgmr.msra.gmra.mxu0 %vm79_vm0, %v69_v4  ;;  %199 = vmatmul.msk.f32.vlgmr.msra.gmra.mxu1 %vm79_vm0, %v70_v5 }
  0x94   :  { %v103_v7 = vpop.f32.mrf.mxu0  ;;  %v106_v8 = vpop.f32.mrf.mxu1 }
  0x95   :  { %v104_v9 = vadd.f32 %v213_v6, %v103_v7  ;;  %v107_v10 = vadd.f32 %v213_v6, %v106_v8 }
  0x97   :  { %109 = vst.msk [vmem:[#allocation8] sm:$0xff] %vm79_vm0, %v104_v9  ;;  %113 = vrot.lane.b32.xlu1 %v104_v9, %s375_s13  ;;  %v123_v11 = vmul.f32 0.5, %v104_v9  ;;  %v124_v13 = vmul.f32 0.5, %v107_v10 }
  0x98   :  { %110 = vst.msk [vmem:[#allocation8 + $0x8] sm:$0xff] %vm79_vm0, %v107_v10 }
  0x99   :  { %v125_v12 = vmul.f32 1.442695, %v123_v11  ;;  %v127_v14 = vmul.f32 1.442695, %v124_v13  ;;  %155 = dma.vmem_to_hbm [thread:$0]  %s148_s17, 256, %s150_s15, [#allocation4], %s371_s29, %s371_s29, %s372_s30  }
  0x9b   :  { %214 = vpow2.f32 %v125_v12 }
  0x9c   :  { %216 = vpow2.f32 %v127_v14 }
  0x9f   :  { %115 = vrot.lane.b32.xlu1 %v107_v10, %s375_s13 }
  0xa1   :  { %v215_v15 = vpop.eup %214 }
  0xa2   :  { %131 = vrot.lane.b32.xlu0 %v215_v15, %s375_s13  ;;  %v217_v16 = vpop.eup %216 }
  0xaa   :  { %133 = vrot.lane.b32.xlu0 %v217_v16, %s375_s13 }
 0x109   :  { %v114_v17 = vpop.permute.xlu1 %113 }
 0x10a   :  { %119 = vst.msk [vmem:[#allocation9] sm:$0xff] %vm79_vm0, %v114_v17 }
 0x111   :  { %v116_v18 = vpop.permute.xlu1 %115 }
 0x112   :  { %120 = vst.msk [vmem:[#allocation9 + $0x8] sm:$0xff] %vm79_vm0, %v116_v18 }
 0x113   :  { %168 = dma.vmem_to_hbm [thread:$0]  %s161_s19, 256, %s163_s4, [#allocation10], %s371_s29, %s371_s29, %s372_s30  }
 0x114   :  { %v132_v20 = vpop.permute.xlu0 %131 }
 0x115   :  { %v137_v21 = vmul.f32 %v132_v20, %v121_v19 }
 0x117   :  { %v139_v22 = vadd.f32 %v137_v21, %v104_v9 }
 0x119   :  { %141 = vst.msk [vmem:[#allocation11] sm:$0xff] %vm79_vm0, %v139_v22 }
 0x11c   :  { %v134_v24 = vpop.permute.xlu0 %133 }
 0x11d   :  { %v138_v25 = vmul.f32 %v134_v24, %v122_v23 }
 0x11f   :  { %v140_v26 = vadd.f32 %v138_v25, %v107_v10 }
 0x121   :  { %142 = vst.msk [vmem:[#allocation11 + $0x8] sm:$0xff] %vm79_vm0, %v140_v26 }
 0x122   :  { %181 = dma.vmem_to_hbm [thread:$0]  %s174_s23, 256, %s176_s25, [#allocation10], %s371_s29, %s371_s29, %s372_s30  }
 0x123   :  { %366 = dma.done.wait [#allocation4], 256  }
 0x124   :  { %367 = vsyncadd [#allocation4], 4294967040 }
 0x125   :  { %368 = dma.done.wait [#allocation10], 512  }
 0x126   :  { %369 = vsyncadd [#allocation10], 4294966784 }
 0x127   :  { %194 = vsyncpa [#allocation3], 1 }
 0x128   :  { %195 = vsyncpa [#allocation6], 1 }
 0x129   :  { %196 = vsyncpa [#allocation4], 1 }
 0x12a   :  { %197 = vsyncpa [#allocation10], 1 }

</bundles_post_ra>
